<compile_context>
chip_gen: v7x
topology: tpu7x:2x2x1
jax: 0.10.0
libtpu: 0.0.40
codegen_flags: <defaults>
</compile_context>

<pallas_src>
import jax
import jax.numpy as jnp
from jax.experimental import pallas as pl
from jax.experimental.pallas import tpu as pltpu


STATE_DIM = 32
ACTION_DIM = 8
HIDDEN_DIM = 32       # logical hidden width of the injected trans_delta MLP
HIDDEN_PAD = 128      # hidden padded to one full TPU lane width (MXU / vreg aligned)
BATCH_TILE = 1024     # max batch rows per grid step (per-step VMEM stays far below limits)


def _round_up(v, m):
    return ((v + m - 1) // m) * m


def _predictor_kernel(x_ref, a_ref, w1x_ref, w1a_ref, b1_ref,
                      w2_ref, b2_ref, w3_ref, b3_ref, o_ref):
    """Fused 3-layer MLP: (TB, S)+(TB, A) -> (TB, Hp) -> (TB, Hp) -> (TB, S)."""
    x = x_ref[...].astype(jnp.bfloat16)
    a = a_ref[...].astype(jnp.bfloat16)
    h1 = (jnp.dot(x, w1x_ref[...], preferred_element_type=jnp.float32)
          + jnp.dot(a, w1a_ref[...], preferred_element_type=jnp.float32)
          + b1_ref[...])
    # ReLU after the bf16 cast: identical result for ReLU, half the VALU vreg traffic.
    h1 = jnp.maximum(h1.astype(jnp.bfloat16), 0.0)
    h2 = jnp.dot(h1, w2_ref[...], preferred_element_type=jnp.float32) + b2_ref[...]
    h2 = jnp.maximum(h2.astype(jnp.bfloat16), 0.0)
    out = jnp.dot(h2, w3_ref[...], preferred_element_type=jnp.float32) + b3_ref[...]
    o_ref[...] = out.astype(o_ref.dtype)


def predictor_forward(x, a, kernel_params, *, batch_tile=BATCH_TILE):
    """Predictor.forward(x, a) == trans_delta(x, a) with trans_delta = 3-layer MLP."""
    w1x, w1a, b1, w2, b2, w3, b3 = kernel_params
    B, Sx = x.shape
    A = a.shape[1]
    Hp = w2.shape[0]
    S = w3.shape[1]

    # Batch tile: multiple of 16 (sublane / bf16 pack), capped by batch_tile, and sized so
    # the batch grid has at least 2 steps whenever possible (keeps both v7x TCs busy).
    tb = min(_round_up(batch_tile, 16), _round_up(pl.cdiv(B, 2), 16))
    tb = max(tb, 16)
    nb = pl.cdiv(B, tb)
    # No wrapper-side padding/slicing: Pallas partial-block handling covers the tail tile
    # (out-of-bounds output rows are never written; rows are independent in an MLP).

    flops = 2 * B * (Sx * Hp + A * Hp + Hp * Hp + Hp * S)
    bytes_accessed = (
        B * (Sx + A + S) * 4                                       # x, a, out (f32)
        + (w1x.size + w1a.size + w2.size + w3.size) * 2            # bf16 weights
        + (b1.size + b2.size + b3.size) * 4                        # f32 biases
    )

    return pl.pallas_call(
        _predictor_kernel,
        out_shape=jax.ShapeDtypeStruct((B, S), jnp.float32),
        grid=(nb,),
        in_specs=[
            pl.BlockSpec((tb, Sx), lambda i: (i, 0)),
            pl.BlockSpec((tb, A), lambda i: (i, 0)),
            # Weights/biases: constant index maps -> VMEM-resident across grid steps.
            pl.BlockSpec(w1x.shape, lambda i: (0, 0)),
            pl.BlockSpec(w1a.shape, lambda i: (0, 0)),
            pl.BlockSpec(b1.shape, lambda i: (0, 0)),
            pl.BlockSpec(w2.shape, lambda i: (0, 0)),
            pl.BlockSpec(b2.shape, lambda i: (0, 0)),
            pl.BlockSpec(w3.shape, lambda i: (0, 0)),
            pl.BlockSpec(b3.shape, lambda i: (0, 0)),
        ],
        out_specs=pl.BlockSpec((tb, S), lambda i: (i, 0)),
        compiler_params=pltpu.CompilerParams(
            dimension_semantics=("parallel",)),
        cost_estimate=pl.CostEstimate(
            flops=flops, transcendentals=0, bytes_accessed=bytes_accessed),
    )(x, a, w1x, w1a, b1, w2, b2, w3, b3)


def init_params(key, state_dim, action_dim, hidden_dim):
    """Logical f32 weights (shapes match the nn.Linear layers of the MLP trans_delta)."""
    ks = jax.random.split(key, 6)
    in_dim = state_dim + action_dim

    def lin(kw, kb, fan_in, fan_out):
        # uniform(-1/sqrt(fan_in), 1/sqrt(fan_in)) like torch nn.Linear default init
        bound = 1.0 / jnp.sqrt(jnp.float32(fan_in))
        w = jax.random.uniform(kw, (fan_in, fan_out), jnp.float32, -bound, bound)
        b = jax.random.uniform(kb, (1, fan_out), jnp.float32, -bound, bound)
        return w, b

    w1, b1 = lin(ks[0], ks[1], in_dim, hidden_dim)
    w2, b2 = lin(ks[2], ks[3], hidden_dim, hidden_dim)
    w3, b3 = lin(ks[4], ks[5], hidden_dim, state_dim)
    return (w1, b1, w2, b2, w3, b3)


def prepare_kernel_params(params, state_dim, hidden_pad=HIDDEN_PAD):
    """Split W1 into (state, action) halves, zero-pad hidden to 128, cast weights to bf16."""
    w1, b1, w2, b2, w3, b3 = params
    hidden = w2.shape[0]
    ph = hidden_pad - hidden
    w1x = jnp.pad(w1[:state_dim], ((0, 0), (0, ph))).astype(jnp.bfloat16)
    w1a = jnp.pad(w1[state_dim:], ((0, 0), (0, ph))).astype(jnp.bfloat16)
    b1p = jnp.pad(b1, ((0, 0), (0, ph)))
    w2p = jnp.pad(w2, ((0, ph), (0, ph))).astype(jnp.bfloat16)
    b2p = jnp.pad(b2, ((0, 0), (0, ph)))
    w3p = jnp.pad(w3, ((0, ph), (0, 0))).astype(jnp.bfloat16)
    return (w1x, w1a, b1p, w2p, b2p, w3p, b3)


def reference_forward(x, a, params):
    """Pure-JAX reference replicating the kernel's bf16-matmul / f32-accumulate numerics."""
    w1, b1, w2, b2, w3, b3 = params
    s = x.shape[1]
    xb = x.astype(jnp.bfloat16)
    ab = a.astype(jnp.bfloat16)
    h1 = (jnp.dot(xb, w1[:s].astype(jnp.bfloat16), preferred_element_type=jnp.float32)
          + jnp.dot(ab, w1[s:].astype(jnp.bfloat16), preferred_element_type=jnp.float32)
          + b1)
    h1 = jnp.maximum(h1, 0.0).astype(jnp.bfloat16)
    h2 = jnp.dot(h1, w2.astype(jnp.bfloat16), preferred_element_type=jnp.float32) + b2
    h2 = jnp.maximum(h2, 0.0).astype(jnp.bfloat16)
    return jnp.dot(h2, w3.astype(jnp.bfloat16), preferred_element_type=jnp.float32) + b3


if __name__ == "__main__":
    B = 512  # batched so the grid splits into 2 tiles (both v7x TCs) with resident weights

    key = jax.random.PRNGKey(0)
    kx, ka, kp = jax.random.split(key, 3)

    x = jax.random.normal(kx, (B, STATE_DIM), jnp.float32)
    # one-hot actions, like a discrete-action transition model
    a_idx = jax.random.randint(ka, (B,), 0, ACTION_DIM)
    a = jax.nn.one_hot(a_idx, ACTION_DIM, dtype=jnp.float32)

    params = init_params(kp, STATE_DIM, ACTION_DIM, HIDDEN_DIM)
    kernel_params = prepare_kernel_params(params, STATE_DIM)

    out = predictor_forward(x, a, kernel_params)
    out = jax.block_until_ready(out)

    ref = reference_forward(x, a, params)
    assert out.shape == (B, STATE_DIM)
    assert jnp.allclose(out, ref, atol=1e-3, rtol=1e-3), float(jnp.max(jnp.abs(out - ref)))

    print("KERNEL_OK")
</pallas_src>

<mosaic_0001>
module attributes {stable_mosaic.version = 11 : i64} {
  func.func @_predictor_kernel(%arg0: i32, %arg1: memref<256x32xf32, #tpu.memory_space<vmem>>, %arg2: memref<256x8xf32, #tpu.memory_space<vmem>>, %arg3: memref<32x128xbf16, #tpu.memory_space<vmem>>, %arg4: memref<8x128xbf16, #tpu.memory_space<vmem>>, %arg5: memref<1x128xf32, #tpu.memory_space<vmem>>, %arg6: memref<128x128xbf16, #tpu.memory_space<vmem>>, %arg7: memref<1x128xf32, #tpu.memory_space<vmem>>, %arg8: memref<128x32xbf16, #tpu.memory_space<vmem>>, %arg9: memref<1x32xf32, #tpu.memory_space<vmem>>, %arg10: memref<256x32xf32, #tpu.memory_space<vmem>>) attributes {dimension_semantics = [#tpu.dimension_semantics<parallel>], iteration_bounds = array<i64: 2>, scalar_prefetch = 0 : i64, scratch_operands = 0 : i64, tpu.core_type = #tpu.core_type<tc>, window_params = [{transform_indices = @transform_0, window_bounds = array<i64: 256, 32>}, {transform_indices = @transform_1, window_bounds = array<i64: 256, 8>}, {pipeline_mode = #tpu.pipeline_mode<synchronous>, transform_indices = @transform_2, window_bounds = array<i64: 32, 128>}, {pipeline_mode = #tpu.pipeline_mode<synchronous>, transform_indices = @transform_3, window_bounds = array<i64: 8, 128>}, {pipeline_mode = #tpu.pipeline_mode<synchronous>, transform_indices = @transform_4, window_bounds = array<i64: 1, 128>}, {pipeline_mode = #tpu.pipeline_mode<synchronous>, transform_indices = @transform_5, window_bounds = array<i64: 128, 128>}, {pipeline_mode = #tpu.pipeline_mode<synchronous>, transform_indices = @transform_6, window_bounds = array<i64: 1, 128>}, {pipeline_mode = #tpu.pipeline_mode<synchronous>, transform_indices = @transform_7, window_bounds = array<i64: 128, 32>}, {pipeline_mode = #tpu.pipeline_mode<synchronous>, transform_indices = @transform_8, window_bounds = array<i64: 1, 32>}, {transform_indices = @transform_9, window_bounds = array<i64: 256, 32>}]} {
    %c0 = arith.constant 0 : index
    %c0_0 = arith.constant 0 : index
    %0 = vector.load %arg1[%c0, %c0_0] : memref<256x32xf32, #tpu.memory_space<vmem>>, vector<256x32xf32>
    %1 = arith.truncf %0 : vector<256x32xf32> to vector<256x32xbf16>
    %c0_1 = arith.constant 0 : index
    %c0_2 = arith.constant 0 : index
    %2 = vector.load %arg2[%c0_1, %c0_2] : memref<256x8xf32, #tpu.memory_space<vmem>>, vector<256x8xf32>
    %3 = arith.truncf %2 : vector<256x8xf32> to vector<256x8xbf16>
    %c0_3 = arith.constant 0 : index
    %c0_4 = arith.constant 0 : index
    %4 = vector.load %arg3[%c0_3, %c0_4] : memref<32x128xbf16, #tpu.memory_space<vmem>>, vector<32x128xbf16>
    %cst = arith.constant dense<0.000000e+00> : vector<256x128xf32>
    %5 = tpu.matmul %1, %4, %cst {dimension_numbers = #tpu.dot_dimension_numbers<[1], [0], [0], [1], [0, 0, 1, 1], [], []>} : vector<256x32xbf16>, vector<32x128xbf16>, vector<256x128xf32> -> vector<256x128xf32>
    %c0_5 = arith.constant 0 : index
    %c0_6 = arith.constant 0 : index
    %6 = vector.load %arg4[%c0_5, %c0_6] : memref<8x128xbf16, #tpu.memory_space<vmem>>, vector<8x128xbf16>
    %cst_7 = arith.constant dense<0.000000e+00> : vector<256x128xf32>
    %7 = tpu.matmul %3, %6, %cst_7 {dimension_numbers = #tpu.dot_dimension_numbers<[1], [0], [0], [1], [0, 0, 1, 1], [], []>} : vector<256x8xbf16>, vector<8x128xbf16>, vector<256x128xf32> -> vector<256x128xf32>
    %8 = arith.addf %5, %7 : vector<256x128xf32>
    %c0_8 = arith.constant 0 : index
    %c0_9 = arith.constant 0 : index
    %9 = vector.load %arg5[%c0_8, %c0_9] : memref<1x128xf32, #tpu.memory_space<vmem>>, vector<1x128xf32>
    %10 = vector.broadcast %9 : vector<1x128xf32> to vector<256x128xf32>
    %11 = arith.addf %8, %10 : vector<256x128xf32>
    %12 = arith.truncf %11 : vector<256x128xf32> to vector<256x128xbf16>
    %cst_10 = arith.constant 0.000000e+00 : bf16
    %13 = vector.broadcast %cst_10 : bf16 to vector<256x128xbf16>
    %14 = arith.maximumf %12, %13 : vector<256x128xbf16>
    %c0_11 = arith.constant 0 : index
    %c0_12 = arith.constant 0 : index
    %15 = vector.load %arg6[%c0_11, %c0_12] : memref<128x128xbf16, #tpu.memory_space<vmem>>, vector<128x128xbf16>
    %cst_13 = arith.constant dense<0.000000e+00> : vector<256x128xf32>
    %16 = tpu.matmul %14, %15, %cst_13 {dimension_numbers = #tpu.dot_dimension_numbers<[1], [0], [0], [1], [0, 0, 1, 1], [], []>} : vector<256x128xbf16>, vector<128x128xbf16>, vector<256x128xf32> -> vector<256x128xf32>
    %c0_14 = arith.constant 0 : index
    %c0_15 = arith.constant 0 : index
    %17 = vector.load %arg7[%c0_14, %c0_15] : memref<1x128xf32, #tpu.memory_space<vmem>>, vector<1x128xf32>
    %18 = vector.broadcast %17 : vector<1x128xf32> to vector<256x128xf32>
    %19 = arith.addf %16, %18 : vector<256x128xf32>
    %20 = arith.truncf %19 : vector<256x128xf32> to vector<256x128xbf16>
    %cst_16 = arith.constant 0.000000e+00 : bf16
    %21 = vector.broadcast %cst_16 : bf16 to vector<256x128xbf16>
    %22 = arith.maximumf %20, %21 : vector<256x128xbf16>
    %c0_17 = arith.constant 0 : index
    %c0_18 = arith.constant 0 : index
    %23 = vector.load %arg8[%c0_17, %c0_18] : memref<128x32xbf16, #tpu.memory_space<vmem>>, vector<128x32xbf16>
    %cst_19 = arith.constant dense<0.000000e+00> : vector<256x32xf32>
    %24 = tpu.matmul %22, %23, %cst_19 {dimension_numbers = #tpu.dot_dimension_numbers<[1], [0], [0], [1], [0, 0, 1, 1], [], []>} : vector<256x128xbf16>, vector<128x32xbf16>, vector<256x32xf32> -> vector<256x32xf32>
    %c0_20 = arith.constant 0 : index
    %c0_21 = arith.constant 0 : index
    %25 = vector.load %arg9[%c0_20, %c0_21] : memref<1x32xf32, #tpu.memory_space<vmem>>, vector<1x32xf32>
    %26 = vector.broadcast %25 : vector<1x32xf32> to vector<256x32xf32>
    %27 = arith.addf %24, %26 : vector<256x32xf32>
    %c0_22 = arith.constant 0 : index
    %c0_23 = arith.constant 0 : index
    %28 = vector.load %arg10[%c0_22, %c0_23] : memref<256x32xf32, #tpu.memory_space<vmem>>, vector<256x32xf32>
    tpu.vector_store %arg10[%c0_22, %c0_23], %27 {strides = array<i32>} : memref<256x32xf32, #tpu.memory_space<vmem>>, vector<256x32xf32>,
    return
  }
  func.func @transform_0(%arg0: i32) -> (i32, i32) {
    %c0_i32 = arith.constant 0 : i32
    %c0_i32_0 = arith.constant 0 : i32
    return %arg0, %c0_i32 : i32, i32
  }
  func.func @transform_1(%arg0: i32) -> (i32, i32) {
    %c0_i32 = arith.constant 0 : i32
    %c0_i32_0 = arith.constant 0 : i32
    return %arg0, %c0_i32 : i32, i32
  }
  func.func @transform_2(%arg0: i32) -> (i32, i32) {
    %c0_i32 = arith.constant 0 : i32
    %c0_i32_0 = arith.constant 0 : i32
    %c0_i32_1 = arith.constant 0 : i32
    return %c0_i32, %c0_i32_0 : i32, i32
  }
  func.func @transform_3(%arg0: i32) -> (i32, i32) {
    %c0_i32 = arith.constant 0 : i32
    %c0_i32_0 = arith.constant 0 : i32
    %c0_i32_1 = arith.constant 0 : i32
    return %c0_i32, %c0_i32_0 : i32, i32
  }
  func.func @transform_4(%arg0: i32) -> (i32, i32) {
    %c0_i32 = arith.constant 0 : i32
    %c0_i32_0 = arith.constant 0 : i32
    %c0_i32_1 = arith.constant 0 : i32
    return %c0_i32, %c0_i32_0 : i32, i32
  }
  func.func @transform_5(%arg0: i32) -> (i32, i32) {
    %c0_i32 = arith.constant 0 : i32
    %c0_i32_0 = arith.constant 0 : i32
    %c0_i32_1 = arith.constant 0 : i32
    return %c0_i32, %c0_i32_0 : i32, i32
  }
  func.func @transform_6(%arg0: i32) -> (i32, i32) {
    %c0_i32 = arith.constant 0 : i32
    %c0_i32_0 = arith.constant 0 : i32
    %c0_i32_1 = arith.constant 0 : i32
    return %c0_i32, %c0_i32_0 : i32, i32
  }
  func.func @transform_7(%arg0: i32) -> (i32, i32) {
    %c0_i32 = arith.constant 0 : i32
    %c0_i32_0 = arith.constant 0 : i32
    %c0_i32_1 = arith.constant 0 : i32
    return %c0_i32, %c0_i32_0 : i32, i32
  }
  func.func @transform_8(%arg0: i32) -> (i32, i32) {
    %c0_i32 = arith.constant 0 : i32
    %c0_i32_0 = arith.constant 0 : i32
    %c0_i32_1 = arith.constant 0 : i32
    return %c0_i32, %c0_i32_0 : i32, i32
  }
  func.func @transform_9(%arg0: i32) -> (i32, i32) {
    %c0_i32 = arith.constant 0 : i32
    %c0_i32_0 = arith.constant 0 : i32
    return %arg0, %c0_i32 : i32, i32
  }
}

</mosaic_0001>

<bundles_post_ra>
// kernel: tpu_custom_call.1
= control target key start
LH: loop header
LB: loop body
LE: loop exit
PB: predicated region body
PF: predicated region fallthrough
CT: control target
= control target key end

     0   :  { %s2013_s30 = smov 0   ;;  %s2446_s0 = inlined_call_operand.vmem [shape: f32[512,32], index: 0, kind: input, shape index: {}]   ;;  %s2447_s1 = inlined_call_operand.vmem [shape: f32[512,8], index: 1, kind: input, shape index: {}]   ;;  %s2448_s2 = inlined_call_operand.vmem [shape: bf16[32,128], index: 2, kind: input, shape index: {}]   ;;  %s2449_s3 = inlined_call_operand.vmem [shape: bf16[8,128], index: 3, kind: input, shape index: {}]   ;;  %s2450_s4 = inlined_call_operand.vmem [shape: f32[1,128], index: 4, kind: input, shape index: {}]   ;;  %s2451_s5 = inlined_call_operand.vmem [shape: bf16[128,128], index: 5, kind: input, shape index: {}]   ;;  %s2452_s6 = inlined_call_operand.vmem [shape: f32[1,128], index: 6, kind: input, shape index: {}]   ;;  %s2453_s7 = inlined_call_operand.vmem [shape: bf16[128,32], index: 7, kind: input, shape index: {}]   ;;  %s2454_s8 = inlined_call_operand.vmem [shape: f32[1,32], index: 8, kind: input, shape index: {}]   ;;  %s2455_s9 = inlined_call_operand.vmem [shape: f32[512,32], index: 9, kind: output, shape index: {}]  }
   0x1 LB: > { %s1563_s10 = sadd.s32 4294967295, %s1960_s30   ;;  %p1567_p0 = scmp.ge.s32.totalorder %s1960_s30, 1  ;;  %s1960_s30 = sphi %s2013_s30, %s19_s30  }
   0x2   : > { %p299_p1 = scmp.lt.s32.totalorder %s1960_s30, 3 }
   0x4   : > { %p300_p2 = pnand %p1567_p0, %p299_p1 }
   0x5   : > { %v459_v0 = vld [vmem:[%s2449_s3] sm:$0xf] (!%p300_p2)  ;;  %vm509_vm0 = vcmask (!%p300_p2), 1043456   ;;  %s1568_s13 = sshll.u32 (!%p300_p2), %s1563_s10, 5  ;;  %v2037_v4 = vld [vmem:[%s2451_s5 + $0x8] sm:$0xff] (!%p300_p2)   ;;  %vm460_vm1 = vcmask (!%p300_p2), 64512  }
   0x6   : > { %303 = sbr.rel (%p300_p2) target bundleno = 802 (0x322), region = 56  ;;  %v1936_v1 = vld [vmem:[%s2448_s2] sm:$0xff] (!%p300_p2)   ;;  %1926 = vmatprep.subr.msk.bf16.mxu0 (!%p300_p2), %vm509_vm0, %v459_v0  ;;  %v511_v2 = vsel (!%p300_p2), %vm509_vm0, %v459_v0, 0  ;;  %p341_p3 = scmp.lt.s32.totalorder (!%p300_p2), %s1568_s13, 63  ;;  %v1937_v14 = vld [vmem:[%s2448_s2 + $0x8] sm:$0xff] (!%p300_p2)   ;;  %v2060_v15 = vld [vmem:[%s2451_s5 + $0x10] sm:$0xff] (!%p300_p2)  }
   0x7   : > { %1713 = vmatpush3.bf16.msra.mxu0 (!%p300_p2), %v511_v2  ;;  %v2030_v3 = vld [vmem:[%s2451_s5] sm:$0xff] (!%p300_p2)   ;;  %v2074_v20 = vld [vmem:[%s2451_s5 + $0x18] sm:$0xff] (!%p300_p2)   ;;  %v2100_v35 = vld [vmem:[%s2451_s5 + $0x28] sm:$0xff] (!%p300_p2)   ;;  %vm686_vm2 = vcmask (!%p300_p2), 261120  }
   0x8   : > { %1746 = vmatprep.subr.bf16.mxu0 (!%p300_p2), %v1936_v1  ;;  %1878 = vmatprep.subr.bf16.mxu1 (!%p300_p2), %v2030_v3  ;;  %v2095_v33 = vld [vmem:[%s2451_s5 + $0x20] sm:$0xff] (!%p300_p2)   ;;  %v2107_v37 = vld [vmem:[%s2451_s5 + $0x30] sm:$0xff] (!%p300_p2)  }
   0x9   : > { %1886 = vmatpush3.bf16.msra.mxu1 (!%p300_p2), %v2030_v3 }
   0xa   : > { %1879 = vmatprep.subr.bf16.mxu1 (!%p300_p2), %v2037_v4 }
   0xd   : > { %s2457_s13 = smov (!%p341_p3, %s1568_s13), 63  ;;  %1887 = vmatpush3.bf16.msra.mxu1 %v2037_v4 }
   0xe   : > { %s2032_s18 = sshll.u32 %s2457_s13, 3  ;;  %1880 = vmatprep.subr.bf16.mxu1 %v2060_v15 }
   0xf   : > { %s2044_s23 = scalar_lea.vmem %s2447_s1, %s2032_s18  ;;  %s2135_s19 = scalar_lea.vmem %s2446_s0, %s2032_s18 }
  0x10   : > { %v407_v5 = vld [vmem:[%s2044_s23] sm:$0xff]  ;;  %v408_v6 = vld [vmem:[%s2044_s23 + $0x8] sm:$0xff]  ;;  %v409_v7 = vld [vmem:[%s2044_s23 + $0x10] sm:$0xff]  ;;  %s2345_s27 = scalar_lea.vmem %s2455_s9, %s2032_s18 }
  0x11   : > { %v439_v8 = vpack.c.bf16 %v408_v6, %v407_v5  ;;  %v410_v9 = vld [vmem:[%s2044_s23 + $0x18] sm:$0xff]  ;;  %v411_v10 = vld [vmem:[%s2044_s23 + $0x20] sm:$0xff]  ;;  %v412_v11 = vld [vmem:[%s2044_s23 + $0x28] sm:$0xff]  ;;  %1888 = vmatpush3.bf16.msra.mxu1 %v2060_v15 }
  0x12   : > { %v440_v12 = vpack.c.bf16 %v410_v9, %v409_v7  ;;  %v441_v13 = vpack.c.bf16 %v412_v11, %v411_v10  ;;  %v413_v16 = vld [vmem:[%s2044_s23 + $0x30] sm:$0xff]  ;;  %v414_v17 = vld [vmem:[%s2044_s23 + $0x38] sm:$0xff]  ;;  %v415_v18 = vld [vmem:[%s2044_s23 + $0x40] sm:$0xff]  ;;  %1881 = vmatprep.subr.bf16.mxu1 %v2074_v20 }
  0x13   : > { %1714 = vmatprep.mubr.msk.bf16.mxu0 %vm460_vm1, %v439_v8  ;;  %v416_v19 = vld [vmem:[%s2044_s23 + $0x48] sm:$0xff]  ;;  %v442_v21 = vpack.c.bf16 %v414_v17, %v413_v16  ;;  %v417_v23 = vld [vmem:[%s2044_s23 + $0x50] sm:$0xff]  ;;  %v418_v24 = vld [vmem:[%s2044_s23 + $0x58] sm:$0xff] }
  0x14   : > { %1715 = vmatmul.mubr.msk.bf16.vlgmr.msra.gmra.mrb[0].mxu0 %vm460_vm1, %v440_v12  ;;  %v443_v22 = vpack.c.bf16 %v416_v19, %v415_v18  ;;  %v419_v25 = vld [vmem:[%s2044_s23 + $0x60] sm:$0xff]  ;;  %v420_v26 = vld [vmem:[%s2044_s23 + $0x68] sm:$0xff]  ;;  %v444_v27 = vpack.c.bf16 %v418_v24, %v417_v23  ;;  %v421_v29 = vld [vmem:[%s2044_s23 + $0x70] sm:$0xff] }
  0x15   : > { %1747 = vmatpush3.bf16.msra.mxu0 %v1936_v1  ;;  %1718 = vmatprep.mubr.msk.bf16.mxu0 %vm460_vm1, %v441_v13  ;;  %v445_v28 = vpack.c.bf16 %v420_v26, %v419_v25  ;;  %v422_v30 = vld [vmem:[%s2044_s23 + $0x78] sm:$0xff]  ;;  %v423_v31 = vld [vmem:[%s2044_s23 + $0x80] sm:$0xff]  ;;  %v424_v32 = vld [vmem:[%s2044_s23 + $0x88] sm:$0xff] }
  0x16   : > { %1748 = vmatprep.subr.bf16.mxu0 %v1937_v14  ;;  %1889 = vmatpush3.bf16.msra.mxu1 %v2074_v20  ;;  %v446_v34 = vpack.c.bf16 %v422_v30, %v421_v29  ;;  %v447_v36 = vpack.c.bf16 %v424_v32, %v423_v31  ;;  %v425_v38 = vld [vmem:[%s2044_s23 + $0x90] sm:$0xff]  ;;  %v426_v39 = vld [vmem:[%s2044_s23 + $0x98] sm:$0xff]  ;;  %v427_v40 = vld [vmem:[%s2044_s23 + $0xa0] sm:$0xff] }
  0x17   : > { %1882 = vmatprep.subr.bf16.mxu1 %v2095_v33  ;;  %v428_v41 = vld [vmem:[%s2044_s23 + $0xa8] sm:$0xff]  ;;  %v448_v42 = vpack.c.bf16 %v426_v39, %v425_v38  ;;  %v429_v44 = vld [vmem:[%s2044_s23 + $0xb0] sm:$0xff]  ;;  %v430_v45 = vld [vmem:[%s2044_s23 + $0xb8] sm:$0xff] }
  0x18   : > { %v449_v43 = vpack.c.bf16 %v428_v41, %v427_v40  ;;  %v431_v46 = vld [vmem:[%s2044_s23 + $0xc0] sm:$0xff]  ;;  %v432_v47 = vld [vmem:[%s2044_s23 + $0xc8] sm:$0xff]  ;;  %v450_v48 = vpack.c.bf16 %v430_v45, %v429_v44  ;;  %v433_v50 = vld [vmem:[%s2044_s23 + $0xd0] sm:$0xff] }
  0x19   : > { %1749 = vmatpush3.bf16.msra.mxu0 %v1937_v14  ;;  %v451_v49 = vpack.c.bf16 %v432_v47, %v431_v46  ;;  %v434_v51 = vld [vmem:[%s2044_s23 + $0xd8] sm:$0xff]  ;;  %v435_v52 = vld [vmem:[%s2044_s23 + $0xe0] sm:$0xff]  ;;  %v436_v53 = vld [vmem:[%s2044_s23 + $0xe8] sm:$0xff] }
  0x1a   : > { %1782 = vmatprep.subr.bf16.mxu0 %v2030_v3  ;;  %1890 = vmatpush3.bf16.msra.mxu1 %v2095_v33  ;;  %v452_v54 = vpack.c.bf16 %v434_v51, %v433_v50  ;;  %v453_v55 = vpack.c.bf16 %v436_v53, %v435_v52  ;;  %v437_v56 = vld [vmem:[%s2044_s23 + $0xf0] sm:$0xff]  ;;  %v438_v57 = vld [vmem:[%s2044_s23 + $0xf8] sm:$0xff]  ;;  %v359_v58 = vld [vmem:[%s2135_s19] sm:$0xff] }
  0x1b   : > { %1883 = vmatprep.subr.bf16.mxu1 %v2100_v35  ;;  %v360_v59 = vld [vmem:[%s2135_s19 + $0x8] sm:$0xff]  ;;  %v454_v60 = vpack.c.bf16 %v438_v57, %v437_v56  ;;  %v361_v62 = vld [vmem:[%s2135_s19 + $0x10] sm:$0xff]  ;;  %v362_v63 = vld [vmem:[%s2135_s19 + $0x18] sm:$0xff]  ;;  %v1962_v57 = vmov 0  }
  0x1c   : > { %1719 = vmatmul.mubr.msk.bf16.gmra.mrb[4].mxu0 %vm460_vm1, %v442_v21  ;;  %v391_v61 = vpack.c.bf16 %v360_v59, %v359_v58  ;;  %v363_v0 = vld [vmem:[%s2135_s19 + $0x20] sm:$0xff]  ;;  %v364_v1 = vld [vmem:[%s2135_s19 + $0x28] sm:$0xff]  ;;  %v392_v2 = vpack.c.bf16 %v362_v63, %v361_v62  ;;  %v365_v6 = vld [vmem:[%s2135_s19 + $0x30] sm:$0xff] }
  0x1d   : > { %1722 = vmatprep.mubr.msk.bf16.mxu0 %vm460_vm1, %v443_v22  ;;  %v393_v5 = vpack.c.bf16 %v364_v1, %v363_v0  ;;  %v366_v7 = vld [vmem:[%s2135_s19 + $0x38] sm:$0xff]  ;;  %v367_v8 = vld [vmem:[%s2135_s19 + $0x40] sm:$0xff]  ;;  %v368_v9 = vld [vmem:[%s2135_s19 + $0x48] sm:$0xff] }
  0x1e   : > { %1891 = vmatpush3.bf16.msra.mxu1 %v2100_v35  ;;  %v394_v10 = vpack.c.bf16 %v366_v7, %v365_v6  ;;  %v395_v11 = vpack.c.bf16 %v368_v9, %v367_v8  ;;  %v369_v12 = vld [vmem:[%s2135_s19 + $0x50] sm:$0xff]  ;;  %v371_v13 = vld [vmem:[%s2135_s19 + $0x60] sm:$0xff]  ;;  %v372_v14 = vld [vmem:[%s2135_s19 + $0x68] sm:$0xff] }
  0x1f   : > { %1884 = vmatprep.subr.bf16.mxu1 %v2107_v37  ;;  %v373_v17 = vld [vmem:[%s2135_s19 + $0x70] sm:$0xff]  ;;  %v375_v18 = vld [vmem:[%s2135_s19 + $0x80] sm:$0xff]  ;;  %v376_v19 = vld [vmem:[%s2135_s19 + $0x88] sm:$0xff] }
  0x20   : > { %v399_v21 = vpack.c.bf16 %v376_v19, %v375_v18  ;;  %v377_v22 = vld [vmem:[%s2135_s19 + $0x90] sm:$0xff]  ;;  %v378_v23 = vld [vmem:[%s2135_s19 + $0x98] sm:$0xff]  ;;  %v379_v24 = vld [vmem:[%s2135_s19 + $0xa0] sm:$0xff] }
  0x21   : > { %v380_v25 = vld [vmem:[%s2135_s19 + $0xa8] sm:$0xff]  ;;  %v400_v26 = vpack.c.bf16 %v378_v23, %v377_v22  ;;  %v382_v29 = vld [vmem:[%s2135_s19 + $0xb8] sm:$0xff]  ;;  %v383_v30 = vld [vmem:[%s2135_s19 + $0xc0] sm:$0xff] }
  0x22   : > { %1892 = vmatpush3.bf16.msra.mxu1 %v2107_v37  ;;  %v384_v31 = vld [vmem:[%s2135_s19 + $0xc8] sm:$0xff]  ;;  %v389_v40 = vld [vmem:[%s2135_s19 + $0xf0] sm:$0xff]  ;;  %v390_v41 = vld [vmem:[%s2135_s19 + $0xf8] sm:$0xff] }
  0x23   : > { %v1946_v44 = vld [vmem:[%s2453_s7] sm:$0xff]   ;;  %v1949_v23 = vld [vmem:[%s2453_s7 + $0x18] sm:$0xff]  }
  0x24   : > { %1723 = vmatmul.mubr.msk.bf16.gmra.mrb[8].mxu0 %vm460_vm1, %v444_v27  ;;  %v401_v27 = vpack.c.bf16 %v380_v25, %v379_v24  ;;  %v2212_v46 = vld [vmem:[%s2450_s4] ss:$0 sm:$0xff] }
  0x25   : > { %1726 = vmatprep.mubr.msk.bf16.mxu0 %vm460_vm1, %v445_v28  ;;  %v381_v28 = vld [vmem:[%s2135_s19 + $0xb0] sm:$0xff] }
  0x26   : > { %v402_v32 = vpack.c.bf16 %v382_v29, %v381_v28 }
  0x2c   : > { %1727 = vmatmul.mubr.msk.bf16.gmra.mrb[12].mxu0 %vm460_vm1, %v446_v34  ;;  %v385_v34 = vld [vmem:[%s2135_s19 + $0xd0] sm:$0xff] }
  0x2d   : > { %1730 = vmatprep.mubr.msk.bf16.mxu0 %vm460_vm1, %v447_v36  ;;  %v387_v36 = vld [vmem:[%s2135_s19 + $0xe0] sm:$0xff] }
  0x34   : > { %1731 = vmatmul.mubr.msk.bf16.gmra.mrb[16].mxu0 %vm460_vm1, %v448_v42  ;;  %v406_v42 = vpack.c.bf16 %v390_v41, %v389_v40 }
  0x35   : > { %1734 = vmatprep.mubr.msk.bf16.mxu0 %vm460_vm1, %v449_v43  ;;  %v1945_v43 = vld [vmem:[%s2451_s5 + $0x38] sm:$0xff]  }
  0x36   : > { %1885 = vmatprep.subr.bf16.mxu1 %v1945_v43 }
  0x37   : > { %1893 = vmatpush3.bf16.msra.mxu1 %v1945_v43 }
  0x38   : > { %1830 = vmatprep.subr.bf16.mxu1 %v1946_v44 }
  0x3c   : > { %1735 = vmatmul.mubr.msk.bf16.gmra.mrb[20].mxu0 %vm460_vm1, %v450_v48 }
  0x3d   : > { %1738 = vmatprep.mubr.msk.bf16.mxu0 %vm460_vm1, %v451_v49 }
  0x44   : > { %1739 = vmatmul.mubr.msk.bf16.gmra.mrb[24].mxu0 %vm460_vm1, %v452_v54 }
  0x45   : > { %1742 = vmatprep.mubr.msk.bf16.mxu0 %vm460_vm1, %v453_v55 }
  0x4c   : > { %1743 = vmatmul.mubr.msk.bf16.gmra.mrb[28].mxu0 %vm460_vm1, %v454_v60 }
  0x4d   : > { %1750 = vmatprep.mubr.msk.bf16.mxu0 %vm686_vm2, %v391_v61 }
  0x54   : > { %1751 = vmatmul.mubr.msk.bf16.vlgmr.msra.gmra.mrb[0].mxu0 %vm686_vm2, %v392_v2 }
  0x55   : > { %1754 = vmatprep.mubr.msk.bf16.mxu0 %vm686_vm2, %v393_v5  ;;  %1783 = vmatpush3.bf16.msra.mxu0 %v2030_v3  ;;  %v370_v3 = vld [vmem:[%s2135_s19 + $0x58] sm:$0xff] }
  0x56   : > { %1784 = vmatprep.subr.bf16.mxu0 %v2037_v4  ;;  %v396_v16 = vpack.c.bf16 %v370_v3, %v369_v12 }
  0x59   : > { %1785 = vmatpush3.bf16.msra.mxu0 %v2037_v4  ;;  %v397_v4 = vpack.c.bf16 %v372_v14, %v371_v13 }
  0x5a   : > { %1786 = vmatprep.subr.bf16.mxu0 %v2060_v15 }
  0x5c   : > { %1755 = vmatmul.mubr.msk.bf16.gmra.mrb[4].mxu0 %vm686_vm2, %v394_v10 }
  0x5d   : > { %1758 = vmatprep.mubr.msk.bf16.mxu0 %vm686_vm2, %v395_v11  ;;  %1787 = vmatpush3.bf16.msra.mxu0 %v2060_v15  ;;  %v374_v15 = vld [vmem:[%s2135_s19 + $0x78] sm:$0xff]  ;;  %v1947_v11 = vld [vmem:[%s2453_s7 + $0x8] sm:$0xff]  }
  0x5e   : > { %1788 = vmatprep.subr.bf16.mxu0 %v2074_v20 }
  0x61   : > { %1789 = vmatpush3.bf16.msra.mxu0 %v2074_v20  ;;  %v398_v20 = vpack.c.bf16 %v374_v15, %v373_v17  ;;  %v1948_v15 = vld [vmem:[%s2453_s7 + $0x10] sm:$0xff]  }
  0x62   : > { %1790 = vmatprep.subr.bf16.mxu0 %v2095_v33 }
  0x64   : > { %1759 = vmatmul.mubr.msk.bf16.gmra.mrb[8].mxu0 %vm686_vm2, %v396_v16 }
  0x65   : > { %1762 = vmatprep.mubr.msk.bf16.mxu0 %vm686_vm2, %v397_v4  ;;  %1791 = vmatpush3.bf16.msra.mxu0 %v2095_v33  ;;  %v403_v33 = vpack.c.bf16 %v384_v31, %v383_v30  ;;  %v1950_v31 = vld [vmem:[%s2453_s7 + $0x20] sm:$0xff]  }
  0x66   : > { %1792 = vmatprep.subr.bf16.mxu0 %v2100_v35 }
  0x69   : > { %1793 = vmatpush3.bf16.msra.mxu0 %v2100_v35  ;;  %v386_v35 = vld [vmem:[%s2135_s19 + $0xd8] sm:$0xff] }
  0x6a   : > { %1794 = vmatprep.subr.bf16.mxu0 %v2107_v37  ;;  %v404_v38 = vpack.c.bf16 %v386_v35, %v385_v34 }
  0x6c   : > { %1763 = vmatmul.mubr.msk.bf16.gmra.mrb[12].mxu0 %vm686_vm2, %v398_v20 }
  0x6d   : > { %1766 = vmatprep.mubr.msk.bf16.mxu0 %vm686_vm2, %v399_v21  ;;  %1795 = vmatpush3.bf16.msra.mxu0 %v2107_v37  ;;  %v388_v37 = vld [vmem:[%s2135_s19 + $0xe8] sm:$0xff] }
  0x6e   : > { %v405_v39 = vpack.c.bf16 %v388_v37, %v387_v36  ;;  %1796 = vmatprep.subr.bf16.mxu0 %v1945_v43  ;;  %v1951_v37 = vld [vmem:[%s2453_s7 + $0x28] sm:$0xff]  }
  0x71   : > { %1797 = vmatpush3.bf16.msra.mxu0 %v1945_v43 }
  0x74   : > { %1767 = vmatmul.mubr.msk.bf16.gmra.mrb[16].mxu0 %vm686_vm2, %v400_v26 }
  0x75   : > { %1770 = vmatprep.mubr.msk.bf16.mxu0 %vm686_vm2, %v401_v27 }
  0x7c   : > { %1771 = vmatmul.mubr.msk.bf16.gmra.mrb[20].mxu0 %vm686_vm2, %v402_v32 }
  0x7d   : > { %1774 = vmatprep.mubr.msk.bf16.mxu0 %vm686_vm2, %v403_v33 }
  0x84   : > { %1775 = vmatmul.mubr.msk.bf16.gmra.mrb[24].mxu0 %vm686_vm2, %v404_v38 }
  0x85   : > { %1778 = vmatprep.mubr.msk.bf16.mxu0 %vm686_vm2, %v405_v39 }
  0x8c   : > { %1779 = vmatmul.mubr.msk.bf16.gmra.mrb[28].mxu0 %vm686_vm2, %v406_v42 }
 0x127   : > { %v1752_v45 = vpop.f32.mrb[0].mxu0 }
 0x128   : > { %v769_v47 = vpop.f32.mrb[1].mxu0  ;;  %v905_v49 = vadd.f32 %v1752_v45, %v2212_v46  ;;  %v1952_v45 = vld [vmem:[%s2453_s7 + $0x30] sm:$0xff]  }
 0x129   : > { %v1753_v48 = vpop.f32.mrb[2].mxu0  ;;  %v903_v52 = vadd.f32 %v2212_v46, %v769_v47 }
 0x12a   : > { %v906_v50 = vadd.f32 %v1753_v48, %v2212_v46  ;;  %v772_v51 = vpop.f32.mrb[3].mxu0 }
 0x12b   : > { %v904_v53 = vadd.f32 %v2212_v46, %v772_v51 }
 0x12c   : > { %v936_v54 = vpack.c.bf16 %v906_v50, %v905_v49 }
 0x12d   : > { %v935_v55 = vpack.c.bf16 %v904_v53, %v903_v52 }
 0x12e   : > { %v952_v59 = vmax.bf16 %v1962_v57, %v936_v54 }
 0x12f   : > { %v1756_v56 = vpop.f32.mrb[4].mxu0  ;;  %v951_v58 = vmax.bf16 %v1962_v57, %v935_v55 }
 0x130   : > { %v785_v60 = vpop.f32.mrb[5].mxu0  ;;  %v909_v62 = vadd.f32 %v1756_v56, %v2212_v46 }
 0x131   : > { %v1757_v61 = vpop.f32.mrb[6].mxu0  ;;  %1798 = vmatprep.mubr.bf16.mxu0 %v951_v58  ;;  %v907_v1 = vadd.f32 %v2212_v46, %v785_v60 }
 0x132   : > { %v910_v63 = vadd.f32 %v1757_v61, %v2212_v46  ;;  %v788_v0 = vpop.f32.mrb[7].mxu0  ;;  %1799 = vmatmul.mubr.bf16.vlgmr.msra.gmra.mrb[32].mxu0 %v952_v59 }
 0x133   : > { %v908_v2 = vadd.f32 %v2212_v46, %v788_v0 }
 0x134   : > { %v938_v5 = vpack.c.bf16 %v910_v63, %v909_v62 }
 0x135   : > { %v937_v6 = vpack.c.bf16 %v908_v2, %v907_v1 }
 0x136   : > { %v954_v10 = vmax.bf16 %v1962_v57, %v938_v5 }
 0x137   : > { %v1760_v7 = vpop.f32.mrb[8].mxu0  ;;  %v953_v8 = vmax.bf16 %v1962_v57, %v937_v6 }
 0x138   : > { %v801_v9 = vpop.f32.mrb[9].mxu0  ;;  %v913_v3 = vadd.f32 %v1760_v7, %v2212_v46 }
 0x139   : > { %v1761_v12 = vpop.f32.mrb[10].mxu0  ;;  %1802 = vmatprep.mubr.bf16.mxu1 %v953_v8  ;;  %v911_v16 = vadd.f32 %v2212_v46, %v801_v9 }
 0x13a   : > { %v914_v13 = vadd.f32 %v1761_v12, %v2212_v46  ;;  %v804_v14 = vpop.f32.mrb[11].mxu0  ;;  %1803 = vmatmul.mubr.bf16.vlgmr.msra.gmra.mrb[0].mxu1 %v954_v10 }
 0x13b   : > { %v912_v4 = vadd.f32 %v2212_v46, %v804_v14  ;;  %1831 = vmatpush3.bf16.msra.mxu1 %v1946_v44 }
 0x13c   : > { %v940_v17 = vpack.c.bf16 %v914_v13, %v913_v3  ;;  %1832 = vmatprep.subr.bf16.mxu1 %v1947_v11 }
 0x13d   : > { %v939_v18 = vpack.c.bf16 %v912_v4, %v911_v16 }
 0x13e   : > { %v956_v22 = vmax.bf16 %v1962_v57, %v940_v17 }
 0x13f   : > { %v1764_v19 = vpop.f32.mrb[12].mxu0  ;;  %v955_v20 = vmax.bf16 %v1962_v57, %v939_v18  ;;  %1833 = vmatpush3.bf16.msra.mxu1 %v1947_v11 }
 0x140   : > { %v817_v21 = vpop.f32.mrb[13].mxu0  ;;  %1834 = vmatprep.subr.bf16.mxu1 %v1948_v15  ;;  %v917_v25 = vadd.f32 %v1764_v19, %v2212_v46 }
 0x141   : > { %v1765_v24 = vpop.f32.mrb[14].mxu0  ;;  %1806 = vmatprep.mubr.bf16.mxu1 %v955_v20  ;;  %v915_v28 = vadd.f32 %v2212_v46, %v817_v21 }
 0x142   : > { %v918_v26 = vadd.f32 %v1765_v24, %v2212_v46  ;;  %v820_v27 = vpop.f32.mrb[15].mxu0  ;;  %1807 = vmatmul.mubr.bf16.gmra.mrb[4].mxu1 %v956_v22 }
 0x143   : > { %v916_v29 = vadd.f32 %v2212_v46, %v820_v27  ;;  %1835 = vmatpush3.bf16.msra.mxu1 %v1948_v15 }
 0x144   : > { %v942_v30 = vpack.c.bf16 %v918_v26, %v917_v25  ;;  %1836 = vmatprep.subr.bf16.mxu1 %v1949_v23  ;;  %v2286_v25 = vld [vmem:[%s2452_s6] ss:$0 sm:$0xff] }
 0x145   : > { %v941_v32 = vpack.c.bf16 %v916_v29, %v915_v28 }
 0x146   : > { %v958_v36 = vmax.bf16 %v1962_v57, %v942_v30 }
 0x147   : > { %v1768_v33 = vpop.f32.mrb[16].mxu0  ;;  %v957_v34 = vmax.bf16 %v1962_v57, %v941_v32  ;;  %1837 = vmatpush3.bf16.msra.mxu1 %v1949_v23  ;;  %v1953_v23 = vld [vmem:[%s2453_s7 + $0x38] sm:$0xff]  }
 0x148   : > { %v833_v35 = vpop.f32.mrb[17].mxu0  ;;  %1838 = vmatprep.subr.bf16.mxu1 %v1950_v31  ;;  %v921_v39 = vadd.f32 %v1768_v33, %v2212_v46 }
 0x149   : > { %v1769_v38 = vpop.f32.mrb[18].mxu0  ;;  %1810 = vmatprep.mubr.bf16.mxu1 %v957_v34  ;;  %v919_v42 = vadd.f32 %v2212_v46, %v833_v35 }
 0x14a   : > { %v922_v40 = vadd.f32 %v1769_v38, %v2212_v46  ;;  %v836_v41 = vpop.f32.mrb[19].mxu0  ;;  %1811 = vmatmul.mubr.bf16.gmra.mrb[8].mxu1 %v958_v36 }
 0x14b   : > { %v920_v43 = vadd.f32 %v2212_v46, %v836_v41  ;;  %1839 = vmatpush3.bf16.msra.mxu1 %v1950_v31 }
 0x14c   : > { %v944_v44 = vpack.c.bf16 %v922_v40, %v921_v39  ;;  %1840 = vmatprep.subr.bf16.mxu1 %v1951_v37 }
 0x14d   : > { %v943_v47 = vpack.c.bf16 %v920_v43, %v919_v42 }
 0x14e   : > { %v960_v51 = vmax.bf16 %v1962_v57, %v944_v44 }
 0x14f   : > { %v1772_v48 = vpop.f32.mrb[20].mxu0  ;;  %v959_v49 = vmax.bf16 %v1962_v57, %v943_v47  ;;  %1841 = vmatpush3.bf16.msra.mxu1 %v1951_v37 }
 0x150   : > { %v849_v50 = vpop.f32.mrb[21].mxu0  ;;  %1842 = vmatprep.subr.bf16.mxu1 %v1952_v45  ;;  %v925_v53 = vadd.f32 %v1772_v48, %v2212_v46 }
 0x151   : > { %v1773_v52 = vpop.f32.mrb[22].mxu0  ;;  %1814 = vmatprep.mubr.bf16.mxu1 %v959_v49  ;;  %v923_v56 = vadd.f32 %v2212_v46, %v849_v50 }
 0x152   : > { %v926_v54 = vadd.f32 %v1773_v52, %v2212_v46  ;;  %v852_v55 = vpop.f32.mrb[23].mxu0  ;;  %1815 = vmatmul.mubr.bf16.gmra.mrb[12].mxu1 %v960_v51 }
 0x153   : > { %v924_v58 = vadd.f32 %v2212_v46, %v852_v55  ;;  %1843 = vmatpush3.bf16.msra.mxu1 %v1952_v45 }
 0x154   : > { %v946_v59 = vpack.c.bf16 %v926_v54, %v925_v53  ;;  %1844 = vmatprep.subr.bf16.mxu1 %v1953_v23 }
 0x155   : > { %v945_v60 = vpack.c.bf16 %v924_v58, %v923_v56 }
 0x156   : > { %v962_v0 = vmax.bf16 %v1962_v57, %v946_v59 }
 0x157   : > { %v1776_v61 = vpop.f32.mrb[24].mxu0  ;;  %v961_v62 = vmax.bf16 %v1962_v57, %v945_v60  ;;  %1845 = vmatpush3.bf16.msra.mxu1 %v1953_v23 }
 0x158   : > { %v865_v63 = vpop.f32.mrb[25].mxu0  ;;  %v929_v2 = vadd.f32 %v1776_v61, %v2212_v46 }
 0x159   : > { %v1777_v1 = vpop.f32.mrb[26].mxu0  ;;  %1818 = vmatprep.mubr.bf16.mxu1 %v961_v62  ;;  %v927_v7 = vadd.f32 %v2212_v46, %v865_v63 }
 0x15a   : > { %v930_v5 = vadd.f32 %v1777_v1, %v2212_v46  ;;  %v868_v6 = vpop.f32.mrb[27].mxu0  ;;  %1819 = vmatmul.mubr.bf16.gmra.mrb[16].mxu1 %v962_v0 }
 0x15b   : > { %v928_v8 = vadd.f32 %v2212_v46, %v868_v6 }
 0x15c   : > { %v948_v9 = vpack.c.bf16 %v930_v5, %v929_v2 }
 0x15d   : > { %v947_v10 = vpack.c.bf16 %v928_v8, %v927_v7 }
 0x15e   : > { %v964_v13 = vmax.bf16 %v1962_v57, %v948_v9 }
 0x15f   : > { %v1780_v11 = vpop.f32.mrb[28].mxu0  ;;  %v963_v12 = vmax.bf16 %v1962_v57, %v947_v10 }
 0x160   : > { %v881_v3 = vpop.f32.mrb[29].mxu0  ;;  %v933_v16 = vadd.f32 %v1780_v11, %v2212_v46 }
 0x161   : > { %v1781_v14 = vpop.f32.mrb[30].mxu0  ;;  %1822 = vmatprep.mubr.bf16.mxu1 %v963_v12  ;;  %v931_v15 = vadd.f32 %v2212_v46, %v881_v3 }
 0x162   : > { %v934_v4 = vadd.f32 %v1781_v14, %v2212_v46  ;;  %v884_v17 = vpop.f32.mrb[31].mxu0  ;;  %1823 = vmatmul.mubr.bf16.gmra.mrb[20].mxu1 %v964_v13 }
 0x163   : > { %v932_v18 = vadd.f32 %v2212_v46, %v884_v17 }
 0x164   : > { %v950_v19 = vpack.c.bf16 %v934_v4, %v933_v16 }
 0x165   : > { %v949_v20 = vpack.c.bf16 %v932_v18, %v931_v15 }
 0x166   : > { %v966_v22 = vmax.bf16 %v1962_v57, %v950_v19 }
 0x167   : > { %v965_v21 = vmax.bf16 %v1962_v57, %v949_v20 }
 0x169   : > { %1826 = vmatprep.mubr.bf16.mxu1 %v965_v21 }
 0x16a   : > { %1827 = vmatmul.mubr.bf16.gmra.mrb[24].mxu1 %v966_v22 }
 0x205   : > { %v1800_v24 = vpop.f32.mrb[32].mxu0 }
 0x206   : > { %v1072_v46 = vpop.f32.mrb[33].mxu0  ;;  %v1081_v27 = vadd.f32 %v1800_v24, %v2286_v25 }
 0x207   : > { %v1801_v26 = vpop.f32.mrb[34].mxu0  ;;  %v1073_v30 = vadd.f32 %v2286_v25, %v1072_v46 }
 0x208   : > { %v1084_v28 = vadd.f32 %v1801_v26, %v2286_v25  ;;  %v1075_v29 = vpop.f32.mrb[35].mxu0 }
 0x209   : > { %v1076_v31 = vadd.f32 %v2286_v25, %v1075_v29 }
 0x20a   : > { %v1200_v32 = vpack.c.bf16 %v1084_v28, %v1081_v27 }
 0x20b   : > { %v1199_v33 = vpack.c.bf16 %v1076_v31, %v1073_v30 }
 0x20c   : > { %v1216_v36 = vmax.bf16 %v1962_v57, %v1200_v32 }
 0x20d   : > { %v1804_v34 = vpop.f32.mrb[0].mxu1  ;;  %v1215_v35 = vmax.bf16 %v1962_v57, %v1199_v33 }
 0x20e   : > { %v1088_v37 = vpop.f32.mrb[1].mxu1  ;;  %v1097_v39 = vadd.f32 %v1804_v34, %v2286_v25 }
 0x20f   : > { %v1805_v38 = vpop.f32.mrb[2].mxu1  ;;  %1846 = vmatprep.mubr.bf16.mxu1 %v1215_v35  ;;  %v1089_v42 = vadd.f32 %v2286_v25, %v1088_v37 }
 0x210   : > { %v1100_v40 = vadd.f32 %v1805_v38, %v2286_v25  ;;  %v1091_v41 = vpop.f32.mrb[3].mxu1  ;;  %1847 = vmatmul.mubr.bf16.vlgmr.msra.gmra.mrb[28].mxu1 %v1216_v36 }
 0x211   : > { %v1092_v43 = vadd.f32 %v2286_v25, %v1091_v41 }
 0x212   : > { %v1202_v44 = vpack.c.bf16 %v1100_v40, %v1097_v39 }
 0x213   : > { %v1201_v45 = vpack.c.bf16 %v1092_v43, %v1089_v42 }
 0x214   : > { %v1218_v50 = vmax.bf16 %v1962_v57, %v1202_v44 }
 0x215   : > { %v1808_v47 = vpop.f32.mrb[4].mxu1  ;;  %v1217_v48 = vmax.bf16 %v1962_v57, %v1201_v45 }
 0x216   : > { %v1104_v49 = vpop.f32.mrb[5].mxu1  ;;  %v1113_v52 = vadd.f32 %v1808_v47, %v2286_v25 }
 0x217   : > { %v1809_v51 = vpop.f32.mrb[6].mxu1  ;;  %1850 = vmatprep.mubr.bf16.mxu1 %v1217_v48  ;;  %v1105_v55 = vadd.f32 %v2286_v25, %v1104_v49 }
 0x218   : > { %v1116_v53 = vadd.f32 %v1809_v51, %v2286_v25  ;;  %v1107_v54 = vpop.f32.mrb[7].mxu1  ;;  %1851 = vmatmul.mubr.bf16.gmra.mrb[32].mxu1 %v1218_v50 }
 0x219   : > { %v1108_v56 = vadd.f32 %v2286_v25, %v1107_v54 }
 0x21a   : > { %v1204_v58 = vpack.c.bf16 %v1116_v53, %v1113_v52 }
 0x21b   : > { %v1203_v59 = vpack.c.bf16 %v1108_v56, %v1105_v55 }
 0x21c   : > { %v1220_v63 = vmax.bf16 %v1962_v57, %v1204_v58 }
 0x21d   : > { %v1812_v60 = vpop.f32.mrb[8].mxu1  ;;  %v1219_v61 = vmax.bf16 %v1962_v57, %v1203_v59 }
 0x21e   : > { %v1120_v62 = vpop.f32.mrb[9].mxu1  ;;  %v1129_v1 = vadd.f32 %v1812_v60, %v2286_v25  ;;  %v2339_v60 = vld [vmem:[%s2454_s8] ss:$0 sm:$0xff] }
 0x21f   : > { %v1813_v0 = vpop.f32.mrb[10].mxu1  ;;  %1854 = vmatprep.mubr.bf16.mxu1 %v1219_v61  ;;  %v1121_v6 = vadd.f32 %v2286_v25, %v1120_v62 }
 0x220   : > { %v1132_v2 = vadd.f32 %v1813_v0, %v2286_v25  ;;  %v1123_v5 = vpop.f32.mrb[11].mxu1  ;;  %1855 = vmatmul.mubr.bf16.gmra.mrb[36].mxu1 %v1220_v63 }
 0x221   : > { %v1124_v7 = vadd.f32 %v2286_v25, %v1123_v5 }
 0x222   : > { %v1206_v8 = vpack.c.bf16 %v1132_v2, %v1129_v1 }
 0x223   : > { %v1205_v9 = vpack.c.bf16 %v1124_v7, %v1121_v6 }
 0x224   : > { %v1222_v3 = vmax.bf16 %v1962_v57, %v1206_v8 }
 0x225   : > { %v1816_v10 = vpop.f32.mrb[12].mxu1  ;;  %v1221_v11 = vmax.bf16 %v1962_v57, %v1205_v9 }
 0x226   : > { %v1136_v12 = vpop.f32.mrb[13].mxu1  ;;  %v1145_v14 = vadd.f32 %v1816_v10, %v2286_v25 }
 0x227   : > { %v1817_v13 = vpop.f32.mrb[14].mxu1  ;;  %1858 = vmatprep.mubr.bf16.mxu1 %v1221_v11  ;;  %v1137_v17 = vadd.f32 %v2286_v25, %v1136_v12 }
 0x228   : > { %v1148_v16 = vadd.f32 %v1817_v13, %v2286_v25  ;;  %v1139_v4 = vpop.f32.mrb[15].mxu1  ;;  %1859 = vmatmul.mubr.bf16.gmra.mrb[40].mxu1 %v1222_v3 }
 0x229   : > { %v1140_v15 = vadd.f32 %v2286_v25, %v1139_v4 }
 0x22a   : > { %v1208_v18 = vpack.c.bf16 %v1148_v16, %v1145_v14 }
 0x22b   : > { %v1207_v19 = vpack.c.bf16 %v1140_v15, %v1137_v17 }
 0x22c   : > { %v1224_v23 = vmax.bf16 %v1962_v57, %v1208_v18 }
 0x22d   : > { %v1820_v20 = vpop.f32.mrb[16].mxu1  ;;  %v1223_v21 = vmax.bf16 %v1962_v57, %v1207_v19 }
 0x22e   : > { %v1152_v22 = vpop.f32.mrb[17].mxu1  ;;  %v1161_v46 = vadd.f32 %v1820_v20, %v2286_v25 }
 0x22f   : > { %v1821_v24 = vpop.f32.mrb[18].mxu1  ;;  %1862 = vmatprep.mubr.bf16.mxu1 %v1223_v21  ;;  %v1153_v28 = vadd.f32 %v2286_v25, %v1152_v22 }
 0x230   : > { %v1164_v26 = vadd.f32 %v1821_v24, %v2286_v25  ;;  %v1155_v27 = vpop.f32.mrb[19].mxu1  ;;  %1863 = vmatmul.mubr.bf16.gmra.mrb[44].mxu1 %v1224_v23 }
 0x231   : > { %v1156_v29 = vadd.f32 %v2286_v25, %v1155_v27 }
 0x232   : > { %v1210_v30 = vpack.c.bf16 %v1164_v26, %v1161_v46 }
 0x233   : > { %v1209_v31 = vpack.c.bf16 %v1156_v29, %v1153_v28 }
 0x234   : > { %v1226_v35 = vmax.bf16 %v1962_v57, %v1210_v30 }
 0x235   : > { %v1824_v32 = vpop.f32.mrb[20].mxu1  ;;  %v1225_v33 = vmax.bf16 %v1962_v57, %v1209_v31 }
 0x236   : > { %v1168_v34 = vpop.f32.mrb[21].mxu1  ;;  %v1177_v37 = vadd.f32 %v1824_v32, %v2286_v25 }
 0x237   : > { %v1825_v36 = vpop.f32.mrb[22].mxu1  ;;  %1866 = vmatprep.mubr.bf16.mxu1 %v1225_v33  ;;  %v1169_v40 = vadd.f32 %v2286_v25, %v1168_v34 }
 0x238   : > { %v1180_v38 = vadd.f32 %v1825_v36, %v2286_v25  ;;  %v1171_v39 = vpop.f32.mrb[23].mxu1  ;;  %1867 = vmatmul.mubr.bf16.gmra.mrb[48].mxu1 %v1226_v35 }
 0x239   : > { %v1172_v41 = vadd.f32 %v2286_v25, %v1171_v39 }
 0x23a   : > { %v1212_v42 = vpack.c.bf16 %v1180_v38, %v1177_v37 }
 0x23b   : > { %v1211_v43 = vpack.c.bf16 %v1172_v41, %v1169_v40 }
 0x23c   : > { %v1228_v48 = vmax.bf16 %v1962_v57, %v1212_v42 }
 0x23d   : > { %v1828_v44 = vpop.f32.mrb[24].mxu1  ;;  %v1227_v45 = vmax.bf16 %v1962_v57, %v1211_v43 }
 0x23e   : > { %v1184_v47 = vpop.f32.mrb[25].mxu1  ;;  %v1193_v50 = vadd.f32 %v1828_v44, %v2286_v25 }
 0x23f   : > { %v1829_v49 = vpop.f32.mrb[26].mxu1  ;;  %1870 = vmatprep.mubr.bf16.mxu1 %v1227_v45  ;;  %v1185_v53 = vadd.f32 %v2286_v25, %v1184_v47 }
 0x240   : > { %v1196_v51 = vadd.f32 %v1829_v49, %v2286_v25  ;;  %v1187_v52 = vpop.f32.mrb[27].mxu1  ;;  %1871 = vmatmul.mubr.bf16.gmra.mrb[52].mxu1 %v1228_v48 }
 0x241   : > { %v1188_v54 = vadd.f32 %v2286_v25, %v1187_v52 }
 0x242   : > { %v1214_v55 = vpack.c.bf16 %v1196_v51, %v1193_v50 }
 0x243   : > { %v1213_v56 = vpack.c.bf16 %v1188_v54, %v1185_v53 }
 0x244   : > { %v1230_v59 = vmax.bf16 %v1962_v57, %v1214_v55 }
 0x245   : > { %v1229_v58 = vmax.bf16 %v1962_v57, %v1213_v56 }
 0x247   : > { %1874 = vmatprep.mubr.bf16.mxu1 %v1229_v58 }
 0x248   : > { %1875 = vmatmul.mubr.bf16.gmra.mrb[56].mxu1 %v1230_v59 }
 0x2e3   : > { %v1848_v25 = vpop.f32.mrb[28].mxu1 }
 0x2e4   : > { %v1345_v61 = vadd.f32 %v1848_v25, %v2339_v60  ;;  %v1336_v57 = vpop.f32.mrb[29].mxu1 }
 0x2e5   : > { %v1337_v62 = vadd.f32 %v2339_v60, %v1336_v57  ;;  %v1849_v63 = vpop.f32.mrb[30].mxu1 }
 0x2e6   : > { %1465 = vst.msk [vmem:[%s2345_s27 + $0x10] sm:$0xff] %vm686_vm2, %v1345_v61  ;;  %v1348_v0 = vadd.f32 %v1849_v63, %v2339_v60  ;;  %v1339_v1 = vpop.f32.mrb[31].mxu1 }
 0x2e7   : > { %1463 = vst.msk [vmem:[%s2345_s27] sm:$0xff] %vm686_vm2, %v1337_v62  ;;  %v1340_v2 = vadd.f32 %v2339_v60, %v1339_v1 }
 0x2e8   : > { %1466 = vst.msk [vmem:[%s2345_s27 + $0x18] sm:$0xff] %vm686_vm2, %v1348_v0 }
 0x2e9   : > { %1464 = vst.msk [vmem:[%s2345_s27 + $0x8] sm:$0xff] %vm686_vm2, %v1340_v2 }
 0x2eb   : > { %v1852_v5 = vpop.f32.mrb[32].mxu1 }
 0x2ec   : > { %v1361_v6 = vadd.f32 %v1852_v5, %v2339_v60  ;;  %v1352_v7 = vpop.f32.mrb[33].mxu1 }
 0x2ed   : > { %v1353_v8 = vadd.f32 %v2339_v60, %v1352_v7  ;;  %v1853_v9 = vpop.f32.mrb[34].mxu1 }
 0x2ee   : > { %1469 = vst.msk [vmem:[%s2345_s27 + $0x30] sm:$0xff] %vm686_vm2, %v1361_v6  ;;  %v1364_v10 = vadd.f32 %v1853_v9, %v2339_v60  ;;  %v1355_v11 = vpop.f32.mrb[35].mxu1 }
 0x2ef   : > { %1467 = vst.msk [vmem:[%s2345_s27 + $0x20] sm:$0xff] %vm686_vm2, %v1353_v8  ;;  %v1356_v12 = vadd.f32 %v2339_v60, %v1355_v11 }
 0x2f0   : > { %1470 = vst.msk [vmem:[%s2345_s27 + $0x38] sm:$0xff] %vm686_vm2, %v1364_v10 }
 0x2f1   : > { %1468 = vst.msk [vmem:[%s2345_s27 + $0x28] sm:$0xff] %vm686_vm2, %v1356_v12 }
 0x2f3   : > { %v1856_v3 = vpop.f32.mrb[36].mxu1 }
 0x2f4   : > { %v1377_v13 = vadd.f32 %v1856_v3, %v2339_v60  ;;  %v1368_v14 = vpop.f32.mrb[37].mxu1 }
 0x2f5   : > { %v1369_v16 = vadd.f32 %v2339_v60, %v1368_v14  ;;  %v1857_v4 = vpop.f32.mrb[38].mxu1 }
 0x2f6   : > { %1473 = vst.msk [vmem:[%s2345_s27 + $0x50] sm:$0xff] %vm686_vm2, %v1377_v13  ;;  %v1380_v17 = vadd.f32 %v1857_v4, %v2339_v60  ;;  %v1371_v15 = vpop.f32.mrb[39].mxu1 }
 0x2f7   : > { %1471 = vst.msk [vmem:[%s2345_s27 + $0x40] sm:$0xff] %vm686_vm2, %v1369_v16  ;;  %v1372_v18 = vadd.f32 %v2339_v60, %v1371_v15 }
 0x2f8   : > { %1474 = vst.msk [vmem:[%s2345_s27 + $0x58] sm:$0xff] %vm686_vm2, %v1380_v17 }
 0x2f9   : > { %1472 = vst.msk [vmem:[%s2345_s27 + $0x48] sm:$0xff] %vm686_vm2, %v1372_v18 }
 0x2fb   : > { %v1860_v19 = vpop.f32.mrb[40].mxu1 }
 0x2fc   : > { %v1393_v20 = vadd.f32 %v1860_v19, %v2339_v60  ;;  %v1384_v21 = vpop.f32.mrb[41].mxu1 }
 0x2fd   : > { %v1385_v22 = vadd.f32 %v2339_v60, %v1384_v21  ;;  %v1861_v23 = vpop.f32.mrb[42].mxu1 }
 0x2fe   : > { %1477 = vst.msk [vmem:[%s2345_s27 + $0x70] sm:$0xff] %vm686_vm2, %v1393_v20  ;;  %v1396_v24 = vadd.f32 %v1861_v23, %v2339_v60  ;;  %v1387_v46 = vpop.f32.mrb[43].mxu1 }
 0x2ff   : > { %1475 = vst.msk [vmem:[%s2345_s27 + $0x60] sm:$0xff] %vm686_vm2, %v1385_v22  ;;  %v1388_v26 = vadd.f32 %v2339_v60, %v1387_v46 }
 0x300   : > { %1478 = vst.msk [vmem:[%s2345_s27 + $0x78] sm:$0xff] %vm686_vm2, %v1396_v24 }
 0x301   : > { %1476 = vst.msk [vmem:[%s2345_s27 + $0x68] sm:$0xff] %vm686_vm2, %v1388_v26 }
 0x303   : > { %v1864_v27 = vpop.f32.mrb[44].mxu1 }
 0x304   : > { %v1409_v28 = vadd.f32 %v1864_v27, %v2339_v60  ;;  %v1400_v29 = vpop.f32.mrb[45].mxu1 }
 0x305   : > { %v1401_v30 = vadd.f32 %v2339_v60, %v1400_v29  ;;  %v1865_v31 = vpop.f32.mrb[46].mxu1 }
 0x306   : > { %1481 = vst.msk [vmem:[%s2345_s27 + $0x90] sm:$0xff] %vm686_vm2, %v1409_v28  ;;  %v1412_v32 = vadd.f32 %v1865_v31, %v2339_v60  ;;  %v1403_v33 = vpop.f32.mrb[47].mxu1 }
 0x307   : > { %1479 = vst.msk [vmem:[%s2345_s27 + $0x80] sm:$0xff] %vm686_vm2, %v1401_v30  ;;  %v1404_v34 = vadd.f32 %v2339_v60, %v1403_v33 }
 0x308   : > { %1482 = vst.msk [vmem:[%s2345_s27 + $0x98] sm:$0xff] %vm686_vm2, %v1412_v32 }
 0x309   : > { %1480 = vst.msk [vmem:[%s2345_s27 + $0x88] sm:$0xff] %vm686_vm2, %v1404_v34 }
 0x30b   : > { %v1868_v35 = vpop.f32.mrb[48].mxu1 }
 0x30c   : > { %v1425_v36 = vadd.f32 %v1868_v35, %v2339_v60  ;;  %v1416_v37 = vpop.f32.mrb[49].mxu1 }
 0x30d   : > { %v1417_v38 = vadd.f32 %v2339_v60, %v1416_v37  ;;  %v1869_v39 = vpop.f32.mrb[50].mxu1 }
 0x30e   : > { %1485 = vst.msk [vmem:[%s2345_s27 + $0xb0] sm:$0xff] %vm686_vm2, %v1425_v36  ;;  %v1428_v40 = vadd.f32 %v1869_v39, %v2339_v60  ;;  %v1419_v41 = vpop.f32.mrb[51].mxu1 }
 0x30f   : > { %1483 = vst.msk [vmem:[%s2345_s27 + $0xa0] sm:$0xff] %vm686_vm2, %v1417_v38  ;;  %v1420_v42 = vadd.f32 %v2339_v60, %v1419_v41 }
 0x310   : > { %1486 = vst.msk [vmem:[%s2345_s27 + $0xb8] sm:$0xff] %vm686_vm2, %v1428_v40 }
 0x311   : > { %1484 = vst.msk [vmem:[%s2345_s27 + $0xa8] sm:$0xff] %vm686_vm2, %v1420_v42 }
 0x313   : > { %v1872_v43 = vpop.f32.mrb[52].mxu1 }
 0x314   : > { %v1441_v44 = vadd.f32 %v1872_v43, %v2339_v60  ;;  %v1432_v45 = vpop.f32.mrb[53].mxu1 }
 0x315   : > { %v1433_v47 = vadd.f32 %v2339_v60, %v1432_v45  ;;  %v1873_v48 = vpop.f32.mrb[54].mxu1 }
 0x316   : > { %1489 = vst.msk [vmem:[%s2345_s27 + $0xd0] sm:$0xff] %vm686_vm2, %v1441_v44  ;;  %v1444_v49 = vadd.f32 %v1873_v48, %v2339_v60  ;;  %v1435_v50 = vpop.f32.mrb[55].mxu1 }
 0x317   : > { %1487 = vst.msk [vmem:[%s2345_s27 + $0xc0] sm:$0xff] %vm686_vm2, %v1433_v47  ;;  %v1436_v51 = vadd.f32 %v2339_v60, %v1435_v50 }
 0x318   : > { %1490 = vst.msk [vmem:[%s2345_s27 + $0xd8] sm:$0xff] %vm686_vm2, %v1444_v49 }
 0x319   : > { %1488 = vst.msk [vmem:[%s2345_s27 + $0xc8] sm:$0xff] %vm686_vm2, %v1436_v51 }
 0x31b   : > { %v1876_v52 = vpop.f32.mrb[56].mxu1 }
 0x31c   : > { %v1457_v53 = vadd.f32 %v1876_v52, %v2339_v60  ;;  %v1448_v54 = vpop.f32.mrb[57].mxu1 }
 0x31d   : > { %v1449_v55 = vadd.f32 %v2339_v60, %v1448_v54  ;;  %v1877_v56 = vpop.f32.mrb[58].mxu1 }
 0x31e   : > { %1493 = vst.msk [vmem:[%s2345_s27 + $0xf0] sm:$0xff] %vm686_vm2, %v1457_v53  ;;  %v1460_v58 = vadd.f32 %v1877_v56, %v2339_v60  ;;  %v1451_v59 = vpop.f32.mrb[59].mxu1 }
 0x31f   : > { %1491 = vst.msk [vmem:[%s2345_s27 + $0xe0] sm:$0xff] %vm686_vm2, %v1449_v55  ;;  %v1452_v25 = vadd.f32 %v2339_v60, %v1451_v59 }
 0x320   : > { %1494 = vst.msk [vmem:[%s2345_s27 + $0xf8] sm:$0xff] %vm686_vm2, %v1460_v58 }
 0x321   : > { %1492 = vst.msk [vmem:[%s2345_s27 + $0xe8] sm:$0xff] %vm686_vm2, %v1452_v25 }
 0x322 PF: > { %s19_s30 = sadd.s32 1, %s1960_s30  }
 0x323   : > { %p16_p4 = scmp.ge.s32.totalorder %s19_s30, 4  }
 0x325   :  { %18 = sbr.rel (!%p16_p4) target bundleno = 1 (0x1), region = 89 }

</bundles_post_ra>
